<compile_context>
chip_gen: v7x
topology: tpu7x:2x2x1
jax: 0.10.0
libtpu: 0.0.40
codegen_flags: <defaults>
</compile_context>

<pallas_src>
import functools

import jax
import jax.numpy as jnp
from jax import lax
from jax.experimental import pallas as pl
from jax.experimental.pallas import tpu as pltpu

_NORM = 16.0  # sum of outer([1, 2, 1], [1, 2, 1])


def _blur_kernel(x_ref, o_ref, *, H, W):
    """x_ref / o_ref: (Cb, H*W) slab of independent flattened (n, c) images."""
    P = H * W
    x = x_ref[...].astype(jnp.float32)

    idx = lax.broadcasted_iota(jnp.int32, (1, P), 1)
    col = idx % W
    first_col = col == 0            # column 0 reflects to column 1
    last_col = col == W - 1         # column W-1 reflects to column W-2
    first_row = idx < W             # row 0 reflects to row 1
    last_row = idx >= P - W         # row H-1 reflects to row H-2

    # Horizontal 1-2-1 pass.  pltpu.roll follows jnp.roll: roll(x, s)[p] == x[p - s].
    left_raw = pltpu.roll(x, 1, axis=1)        # x[p - 1]
    right_raw = pltpu.roll(x, P - 1, axis=1)   # x[p + 1]
    left = jnp.where(first_col, right_raw, left_raw)
    right = jnp.where(last_col, left_raw, right_raw)
    h = left + 2.0 * x + right

    # Vertical 1-2-1 pass (row stride == W in the flattened layout).
    up_raw = pltpu.roll(h, W, axis=1)          # h[p - W]
    down_raw = pltpu.roll(h, P - W, axis=1)    # h[p + W]
    up = jnp.where(first_row, down_raw, up_raw)
    down = jnp.where(last_row, up_raw, down_raw)

    out = (up + 2.0 * h + down) * (1.0 / _NORM)
    o_ref[...] = out.astype(o_ref.dtype)


def _vmem_capacity_bytes():
    try:
        return int(pltpu.get_tpu_info().vmem_capacity_bytes)
    except Exception:
        return 64 << 20  # v7x floor (smallest physical VMEM across generations)


def _pick_block(nc, p, target_f32_bytes=4 << 20):
    """Images (rows of the flattened (NC, H*W) array) per block."""
    row_f32 = p * 4                               # compute path is f32
    cb = int(max(1, target_f32_bytes // row_f32))
    if cb >= nc:
        # Whole problem fits one slab.  If it is big enough to matter, split
        # into two sublane-aligned halves so a 2-TensorCore chip (v7x) can
        # shard the "parallel" grid axis.
        if nc >= 16 and nc * row_f32 > (2 << 20):
            half = (nc // 2) // 8 * 8
            if half >= 8:
                return half
        return nc
    if cb >= 8:
        cb = (cb // 8) * 8                        # keep blocks sublane-aligned
    return cb


@jax.jit
def blur(x):
    """Pallas implementation of Blur.forward.  x: (N, C, H, W)."""
    N, C, H, W = x.shape
    if H < 2 or W < 2:
        raise ValueError("Blur with reflect border requires H >= 2 and W >= 2")
    NC, P = N * C, H * W
    x2 = x.reshape(NC, P)                         # contiguous view; lane-dense last dim

    cb = _pick_block(NC, P)
    grid = (pl.cdiv(NC, cb),)

    slab_io = cb * P * x.dtype.itemsize
    slab_f32 = cb * P * 4
    # 2x double-buffered input + 2x output + ~6 live f32 temporaries + headroom,
    # capped safely below physical VMEM.
    vmem_limit = min(_vmem_capacity_bytes() - (16 << 20),
                     4 * slab_io + 6 * slab_f32 + (8 << 20))
    vmem_limit = int(max(vmem_limit, 16 << 20))

    # TODO(synk): for images so large that a single (1, H*W) row overflows the
    # VMEM budget (>~2Kx2K f32), tile H with a 1-row halo via memory_space=pl.ANY
    # + manual pltpu.make_async_copy (overlapping halos are not expressible with
    # a plain BlockSpec index_map).

    kernel = functools.partial(_blur_kernel, H=H, W=W)
    out = pl.pallas_call(
        kernel,
        out_shape=jax.ShapeDtypeStruct((NC, P), x.dtype),
        grid_spec=pltpu.PrefetchScalarGridSpec(
            num_scalar_prefetch=0,
            grid=grid,
            in_specs=[pl.BlockSpec((cb, P), lambda i: (i, 0))],
            out_specs=pl.BlockSpec((cb, P), lambda i: (i, 0)),
        ),
        compiler_params=pltpu.CompilerParams(
            dimension_semantics=("parallel",),
            vmem_limit_bytes=vmem_limit),
        cost_estimate=pl.CostEstimate(
            flops=7 * NC * P,
            transcendentals=0,
            bytes_accessed=2 * NC * P * x.dtype.itemsize),
    )(x2)
    return out.reshape(N, C, H, W)


def _blur_reference(x):
    """Pure-JAX reference (reflect pad + explicit 3x3 weighted sum)."""
    xf = x.astype(jnp.float32)
    xp = jnp.pad(xf, ((0, 0), (0, 0), (1, 1), (1, 1)), mode="reflect")
    f = jnp.array([1.0, 2.0, 1.0], jnp.float32)
    k = (f[:, None] * f[None, :]) / _NORM
    H, W = x.shape[2], x.shape[3]
    out = sum(k[i, j] * xp[:, :, i:i + H, j:j + W]
              for i in range(3) for j in range(3))
    return out.astype(x.dtype)


if __name__ == "__main__":
    key = jax.random.PRNGKey(0)
    N, C, H, W = 2, 4, 16, 16
    x = jax.random.normal(key, (N, C, H, W), dtype=jnp.float32)

    out = jax.block_until_ready(blur(x))
    ref = _blur_reference(x)

    assert out.shape == (N, C, H, W), out.shape
    assert jnp.allclose(out, ref, atol=1e-5, rtol=1e-5), "mismatch vs reference"
    print("KERNEL_OK")
</pallas_src>

<mosaic_0001>
module attributes {stable_mosaic.version = 11 : i64} {
  func.func @_blur_kernel(%arg0: i32, %arg1: memref<8x256xf32, #tpu.memory_space<vmem>>, %arg2: memref<8x256xf32, #tpu.memory_space<vmem>>) attributes {dimension_semantics = [#tpu.dimension_semantics<parallel>], iteration_bounds = array<i64: 1>, scalar_prefetch = 0 : i64, scratch_operands = 0 : i64, tpu.core_type = #tpu.core_type<tc>, window_params = [{transform_indices = @transform_0, window_bounds = array<i64: 8, 256>}, {transform_indices = @transform_1, window_bounds = array<i64: 8, 256>}]} {
    %c0 = arith.constant 0 : index
    %c0_0 = arith.constant 0 : index
    %0 = vector.load %arg1[%c0, %c0_0] : memref<8x256xf32, #tpu.memory_space<vmem>>, vector<8x256xf32>
    %1 = tpu.iota {dimensions = array<i32: 1>} : vector<1x256xi32>
    %c16_i32 = arith.constant 16 : i32
    %c0_i32 = arith.constant 0 : i32
    %2 = arith.cmpi eq, %c16_i32, %c0_i32 : i32
    %c1_i32 = arith.constant 1 : i32
    %3 = arith.select %2, %c1_i32, %c16_i32 : i32
    %4 = vector.broadcast %3 : i32 to vector<1x256xi32>
    %5 = arith.remsi %1, %4 : vector<1x256xi32>
    %c0_i32_1 = arith.constant 0 : i32
    %6 = vector.broadcast %c0_i32_1 : i32 to vector<1x256xi32>
    %7 = arith.cmpi ne, %5, %6 : vector<1x256xi32>
    %c0_i32_2 = arith.constant 0 : i32
    %8 = vector.broadcast %c0_i32_2 : i32 to vector<1x256xi32>
    %9 = arith.cmpi slt, %5, %8 : vector<1x256xi32>
    %c0_i32_3 = arith.constant 0 : i32
    %10 = arith.cmpi slt, %3, %c0_i32_3 : i32
    %11 = vector.broadcast %10 : i1 to vector<1x256xi1>
    %12 = vector.broadcast %11 : vector<1x256xi1> to vector<1x256xi1>
    %13 = arith.xori %9, %12 : vector<1x256xi1>
    %14 = arith.andi %13, %7 : vector<1x256xi1>
    %15 = vector.broadcast %3 : i32 to vector<1x256xi32>
    %16 = arith.addi %5, %15 : vector<1x256xi32>
    %17 = arith.select %14, %16, %5 : vector<1x256xi1>, vector<1x256xi32>
    %c0_i32_4 = arith.constant 0 : i32
    %18 = vector.broadcast %c0_i32_4 : i32 to vector<1x256xi32>
    %19 = arith.cmpi eq, %17, %18 : vector<1x256xi32>
    %c15_i32 = arith.constant 15 : i32
    %20 = vector.broadcast %c15_i32 : i32 to vector<1x256xi32>
    %21 = arith.cmpi eq, %17, %20 : vector<1x256xi32>
    %c16_i32_5 = arith.constant 16 : i32
    %22 = vector.broadcast %c16_i32_5 : i32 to vector<1x256xi32>
    %23 = arith.cmpi slt, %1, %22 : vector<1x256xi32>
    %c240_i32 = arith.constant 240 : i32
    %24 = vector.broadcast %c240_i32 : i32 to vector<1x256xi32>
    %25 = arith.cmpi sge, %1, %24 : vector<1x256xi32>
    %c1_i32_6 = arith.constant 1 : i32
    %26 = tpu.dynamic_rotate %0 by %c1_i32_6 dim 1 : vector<8x256xf32>, i32 -> vector<8x256xf32>
    %c255_i32 = arith.constant 255 : i32
    %27 = tpu.dynamic_rotate %0 by %c255_i32 dim 1 : vector<8x256xf32>, i32 -> vector<8x256xf32>
    %28 = vector.shape_cast %19 : vector<1x256xi1> to vector<1x256xi1>
    %29 = vector.broadcast %28 : vector<1x256xi1> to vector<8x256xi1>
    %30 = arith.select %29, %27, %26 : vector<8x256xi1>, vector<8x256xf32>
    %31 = vector.shape_cast %21 : vector<1x256xi1> to vector<1x256xi1>
    %32 = vector.broadcast %31 : vector<1x256xi1> to vector<8x256xi1>
    %33 = arith.select %32, %26, %27 : vector<8x256xi1>, vector<8x256xf32>
    %cst = arith.constant 2.000000e+00 : f32
    %34 = vector.broadcast %cst : f32 to vector<8x256xf32>
    %35 = arith.mulf %34, %0 : vector<8x256xf32>
    %36 = arith.addf %30, %35 : vector<8x256xf32>
    %37 = arith.addf %36, %33 : vector<8x256xf32>
    %c16_i32_7 = arith.constant 16 : i32
    %38 = tpu.dynamic_rotate %37 by %c16_i32_7 dim 1 : vector<8x256xf32>, i32 -> vector<8x256xf32>
    %c240_i32_8 = arith.constant 240 : i32
    %39 = tpu.dynamic_rotate %37 by %c240_i32_8 dim 1 : vector<8x256xf32>, i32 -> vector<8x256xf32>
    %40 = vector.shape_cast %23 : vector<1x256xi1> to vector<1x256xi1>
    %41 = vector.broadcast %40 : vector<1x256xi1> to vector<8x256xi1>
    %42 = arith.select %41, %39, %38 : vector<8x256xi1>, vector<8x256xf32>
    %43 = vector.shape_cast %25 : vector<1x256xi1> to vector<1x256xi1>
    %44 = vector.broadcast %43 : vector<1x256xi1> to vector<8x256xi1>
    %45 = arith.select %44, %38, %39 : vector<8x256xi1>, vector<8x256xf32>
    %cst_9 = arith.constant 2.000000e+00 : f32
    %46 = vector.broadcast %cst_9 : f32 to vector<8x256xf32>
    %47 = arith.mulf %46, %37 : vector<8x256xf32>
    %48 = arith.addf %42, %47 : vector<8x256xf32>
    %49 = arith.addf %48, %45 : vector<8x256xf32>
    %cst_10 = arith.constant 6.250000e-02 : f32
    %50 = vector.broadcast %cst_10 : f32 to vector<8x256xf32>
    %51 = arith.mulf %49, %50 : vector<8x256xf32>
    %c0_11 = arith.constant 0 : index
    %c0_12 = arith.constant 0 : index
    %52 = vector.load %arg2[%c0_11, %c0_12] : memref<8x256xf32, #tpu.memory_space<vmem>>, vector<8x256xf32>
    tpu.vector_store %arg2[%c0_11, %c0_12], %51 {strides = array<i32>} : memref<8x256xf32, #tpu.memory_space<vmem>>, vector<8x256xf32>,
    return
  }
  func.func @transform_0(%arg0: i32) -> (i32, i32) {
    %c0_i32 = arith.constant 0 : i32
    %c0_i32_0 = arith.constant 0 : i32
    return %arg0, %c0_i32 : i32, i32
  }
  func.func @transform_1(%arg0: i32) -> (i32, i32) {
    %c0_i32 = arith.constant 0 : i32
    %c0_i32_0 = arith.constant 0 : i32
    return %arg0, %c0_i32 : i32, i32
  }
}

</mosaic_0001>

<bundles_post_ra>
// kernel: blur.1
= control target key start
LH: loop header
LB: loop body
LE: loop exit
PB: predicated region body
PF: predicated region fallthrough
CT: control target
= control target key end

     0   :  { %s120_s8 = smov 127   ;;  %s121_s9 = smov 1   ;;  %v10_v2 = vlaneseq  ;;  %s146_s0 = inlined_call_operand.vmem [shape: f32[8,256], index: 0, kind: input, shape index: {}]   ;;  %s147_s1 = inlined_call_operand.vmem [shape: f32[8,256], index: 1, kind: output, shape index: {}]  }
   0x1   :  { %v8_v0 = vld [vmem:[%s146_s0] sm:$0xff]  ;;  %v9_v1 = vld [vmem:[%s146_s0 + $0x8] sm:$0xff]  ;;  %s122_s0 = smov 16   ;;  %s123_s12 = smov 112  }
   0x2   :  { %52 = vrot.lane.b32.xlu1 %v8_v0, %s120_s8  ;;  %45 = vrot.lane.b32.xlu0 %v8_v0, %s121_s9  ;;  %v11_v3 = vand.u32 127, %v10_v2  ;;  %v71_v9 = vmul.f32 2.0, %v8_v0  ;;  %v72_v10 = vmul.f32 2.0, %v9_v1 }
   0x4   :  { %v12_v4 = vadd.s32 128, %v11_v3  ;;  %v17_v5 = vand.u32 15, %v11_v3  ;;  %vm56_vm0 = vcmp.lt.s32.totalorder %v11_v3, 127  ;;  %vm49_vm1 = vcmp.lt.s32.totalorder %v11_v3, 1 }
   0x5   :  { %vm41_vm6 = vcmp.lt.s32.totalorder %v11_v3, 16  ;;  %vm87_vm7 = vcmp.lt.s32.totalorder %v11_v3, 112 }
   0x6   :  { %54 = vrot.lane.b32.xlu1 %v9_v1, %s120_s8  ;;  %47 = vrot.lane.b32.xlu0 %v9_v1, %s121_s9  ;;  %v24_v6 = vand.u32 15, %v12_v4  ;;  %vm37_vm2 = vcmp.eq.s32.totalorder %v17_v5, 0  ;;  %vm39_vm4 = vcmp.eq.s32.totalorder %v17_v5, 15  ;;  %vm44_vm8 = vcmp.ge.s32.totalorder %v12_v4, 240 }
   0x8   :  { %vm38_vm3 = vcmp.eq.s32.totalorder %v24_v6, 0  ;;  %vm40_vm5 = vcmp.eq.s32.totalorder %v24_v6, 15 }
  0x74   :  { %v53_v7 = vpop.permute.xlu1 %52  ;;  %v46_v8 = vpop.permute.xlu0 %45 }
  0x78   :  { %v55_v11 = vpop.permute.xlu1 %54  ;;  %v48_v12 = vpop.permute.xlu0 %47 }
  0x79   :  { %v57_v13 = vsel %vm56_vm0, %v53_v7, %v55_v11  ;;  %v58_v14 = vsel %vm56_vm0, %v55_v11, %v53_v7  ;;  %v50_v15 = vsel %vm49_vm1, %v46_v8, %v48_v12  ;;  %v51_v16 = vsel %vm49_vm1, %v48_v12, %v46_v8 }
  0x7a   :  { %v63_v17 = vsel %vm37_vm2, %v57_v13, %v51_v16  ;;  %v64_v18 = vsel %vm38_vm3, %v58_v14, %v50_v15  ;;  %v69_v21 = vsel %vm39_vm4, %v51_v16, %v57_v13  ;;  %v70_v22 = vsel %vm40_vm5, %v50_v15, %v58_v14 }
  0x7b   :  { %v73_v19 = vadd.f32 %v71_v9, %v63_v17  ;;  %v74_v20 = vadd.f32 %v72_v10, %v64_v18 }
  0x7d   :  { %v76_v23 = vadd.f32 %v74_v20, %v70_v22  ;;  %v75_v24 = vadd.f32 %v73_v19, %v69_v21 }
  0x7f   :  { %79 = vrot.lane.b32.xlu1 %v76_v23, %s122_s0  ;;  %77 = vrot.lane.b32.xlu0 %v75_v24, %s122_s0  ;;  %v103_v28 = vmul.f32 2.0, %v76_v23  ;;  %v102_v31 = vmul.f32 2.0, %v75_v24 }
  0x83   :  { %85 = vrot.lane.b32.xlu1 %v76_v23, %s123_s12  ;;  %83 = vrot.lane.b32.xlu0 %v75_v24, %s123_s12 }
  0xf1   :  { %v80_v25 = vpop.permute.xlu1 %79  ;;  %v78_v26 = vpop.permute.xlu0 %77 }
  0xf2   :  { %v81_v27 = vsel %vm41_vm6, %v78_v26, %v80_v25  ;;  %v82_v32 = vsel %vm41_vm6, %v80_v25, %v78_v26 }
  0xf3   :  { %v105_v33 = vadd.f32 %v103_v28, %v81_v27 }
  0xf5   :  { %v86_v29 = vpop.permute.xlu1 %85  ;;  %v84_v30 = vpop.permute.xlu0 %83 }
  0xf6   :  { %v88_v34 = vsel %vm87_vm7, %v84_v30, %v86_v29  ;;  %v89_v35 = vsel %vm87_vm7, %v86_v29, %v84_v30 }
  0xf7   :  { %v94_v36 = vsel %vm41_vm6, %v88_v34, %v82_v32  ;;  %v101_v37 = vsel %vm44_vm8, %v81_v27, %v89_v35 }
  0xf8   :  { %v104_v38 = vadd.f32 %v102_v31, %v94_v36  ;;  %v107_v39 = vadd.f32 %v105_v33, %v101_v37 }
  0xfa   :  { %v106_v40 = vadd.f32 %v104_v38, %v88_v34  ;;  %v109_v41 = vmul.f32 0.0625, %v107_v39 }
  0xfc   :  { %v108_v42 = vmul.f32 0.0625, %v106_v40  ;;  %111 = vst [vmem:[%s147_s1 + $0x8] sm:$0xff] %v109_v41 }
  0xfe   :  { %110 = vst [vmem:[%s147_s1] sm:$0xff] %v108_v42 }

</bundles_post_ra>
